<compile_context>
chip_gen: v7x
topology: tpu7x:2x2x1
jax: 0.10.0
libtpu: 0.0.40
codegen_flags: <defaults>
</compile_context>

<pallas_src>
import jax
import jax.numpy as jnp
from jax import lax
from jax.experimental import pallas as pl
from jax.experimental.pallas import tpu as pltpu


def lstm_softmax_kernel(x_ref, wih_ref, whh_ref, b_ref, o_ref, xproj_ref):
    # x_ref:     (S, I)   input sequence (batch=1 squeezed out)
    # wih_ref:   (I, 4H)  transposed weight_ih
    # whh_ref:   (H, 4H)  transposed weight_hh
    # b_ref:     (1, 4H)  bias_ih + bias_hh (pre-fused)
    # o_ref:     (1, H)   softmax(h_T)
    # xproj_ref: (S, 4H)  VMEM scratch: hoisted input projection
    S = x_ref.shape[0]
    H = o_ref.shape[1]

    # Hoist the input projection + bias out of the recurrence: one (S,I)@(I,4H)
    # MXU dot that actually uses MXU rows, instead of S one-row dots on the
    # serial dependence chain.
    xproj_ref[...] = (
        jnp.dot(x_ref[...], wih_ref[...], preferred_element_type=jnp.float32)
        + b_ref[...]
    )

    whh = whh_ref[...]  # keep the recurrent weight live across all steps

    def step(t, carry):
        h, c = carry
        # Only the recurrent dot remains inside the serial chain.
        gates = xproj_ref[pl.ds(t, 1), :] + jnp.dot(
            h, whh, preferred_element_type=jnp.float32
        )  # (1, 4H) -- one full 128-lane vreg for H=32

        # Full-width EUP dispatches (2 per step instead of 4 quarter-width),
        # then pick out the gate windows [i, f, g, o] (torch.nn.LSTMCell order).
        sig = jax.nn.sigmoid(gates)
        th = jnp.tanh(gates)
        i_g = sig[:, 0 * H:1 * H]
        f_g = sig[:, 1 * H:2 * H]
        g_g = th[:, 2 * H:3 * H]
        o_g = sig[:, 3 * H:4 * H]

        c_new = f_g * c + i_g * g_g
        h_new = o_g * jnp.tanh(c_new)
        return (h_new, c_new)

    h0 = jnp.zeros((1, H), jnp.float32)
    c0 = jnp.zeros((1, H), jnp.float32)
    # Short fixed trip count -> fully unroll so the LLO scheduler sees across steps.
    h, _ = lax.fori_loop(0, S, step, (h0, c0), unroll=True)

    # nn.Softmax() on a 2-D tensor -> softmax over dim=1 (the hidden dim).
    m = jnp.max(h, axis=-1, keepdims=True)
    e = jnp.exp(h - m)
    o_ref[...] = (e / jnp.sum(e, axis=-1, keepdims=True)).astype(o_ref.dtype)


def prepare_lstm_params(w_ih, w_hh, b_ih, b_hh):
    """One-time weight prep (transpose + bias fusion). Cache the result; do NOT
    redo this relayout on every forward call."""
    H = w_hh.shape[1]
    wih_t = jnp.transpose(w_ih).astype(jnp.float32)           # (I, 4H)
    whh_t = jnp.transpose(w_hh).astype(jnp.float32)           # (H, 4H)
    b = (b_ih + b_hh).reshape(1, 4 * H).astype(jnp.float32)   # (1, 4H)
    return wih_t, whh_t, b


def test_lstm_forward(net_input, wih_t, whh_t, b):
    """net_input: (S, 1, I) (PyTorch convention); wih_t/whh_t/b from prepare_lstm_params."""
    S, B, I = net_input.shape
    assert B == 1  # TODO(synk): spec hard-codes batch=1 hidden state; batching left out.
    H = whh_t.shape[0]
    x2d = net_input.reshape(S, I).astype(jnp.float32)

    return pl.pallas_call(
        lstm_softmax_kernel,
        out_shape=jax.ShapeDtypeStruct((1, H), jnp.float32),
        in_specs=[
            pl.BlockSpec(memory_space=pltpu.MemorySpace.VMEM),
            pl.BlockSpec(memory_space=pltpu.MemorySpace.VMEM),
            pl.BlockSpec(memory_space=pltpu.MemorySpace.VMEM),
            pl.BlockSpec(memory_space=pltpu.MemorySpace.VMEM),
        ],
        out_specs=pl.BlockSpec(memory_space=pltpu.MemorySpace.VMEM),
        scratch_shapes=[pltpu.VMEM((S, 4 * H), jnp.float32)],
    )(x2d, wih_t, whh_t, b)


if __name__ == "__main__":
    SEQ, BATCH, INPUT_SIZE, HIDDEN = 8, 1, 16, 32

    key = jax.random.PRNGKey(0)
    k_x, k_wih, k_whh, k_bih, k_bhh = jax.random.split(key, 5)

    # Deterministic param init: U(-1/sqrt(H), 1/sqrt(H)) like torch.nn.LSTMCell.
    bound = 1.0 / (HIDDEN ** 0.5)
    w_ih = jax.random.uniform(k_wih, (4 * HIDDEN, INPUT_SIZE), jnp.float32, -bound, bound)
    w_hh = jax.random.uniform(k_whh, (4 * HIDDEN, HIDDEN), jnp.float32, -bound, bound)
    b_ih = jax.random.uniform(k_bih, (4 * HIDDEN,), jnp.float32, -bound, bound)
    b_hh = jax.random.uniform(k_bhh, (4 * HIDDEN,), jnp.float32, -bound, bound)

    x = jax.random.normal(k_x, (SEQ, BATCH, INPUT_SIZE), jnp.float32)

    # One-time prep, then the forward call only launches the kernel.
    wih_t, whh_t, b_fused = prepare_lstm_params(w_ih, w_hh, b_ih, b_hh)
    wih_t, whh_t, b_fused = jax.block_until_ready((wih_t, whh_t, b_fused))

    out = test_lstm_forward(x, wih_t, whh_t, b_fused)
    out = jax.block_until_ready(out)

    # Pure-JAX reference check (same math, outside Pallas).
    def ref(x, w_ih, w_hh, b_ih, b_hh):
        H = w_hh.shape[1]
        h = jnp.zeros((1, H), jnp.float32)
        c = jnp.zeros((1, H), jnp.float32)
        for t in range(x.shape[0]):
            g = x[t] @ w_ih.T + h @ w_hh.T + b_ih + b_hh
            i_g = jax.nn.sigmoid(g[:, :H])
            f_g = jax.nn.sigmoid(g[:, H:2 * H])
            g_g = jnp.tanh(g[:, 2 * H:3 * H])
            o_g = jax.nn.sigmoid(g[:, 3 * H:])
            c = f_g * c + i_g * g_g
            h = o_g * jnp.tanh(c)
        return jax.nn.softmax(h, axis=-1)

    expected = ref(x, w_ih, w_hh, b_ih, b_hh)
    assert out.shape == (1, HIDDEN)
    assert jnp.allclose(out, expected, atol=1e-5, rtol=1e-5)
    print("KERNEL_OK")
</pallas_src>

<mosaic_0001>
module attributes {stable_mosaic.version = 11 : i64} {
  func.func @lstm_softmax_kernel(%arg0: memref<8x16xf32, #tpu.memory_space<vmem>>, %arg1: memref<16x128xf32, #tpu.memory_space<vmem>>, %arg2: memref<32x128xf32, #tpu.memory_space<vmem>>, %arg3: memref<1x128xf32, #tpu.memory_space<vmem>>, %arg4: memref<1x32xf32, #tpu.memory_space<vmem>>, %arg5: memref<8x128xf32, #tpu.memory_space<vmem>>) attributes {dimension_semantics = [], scalar_prefetch = 0 : i64, scratch_operands = 1 : i64, tpu.core_type = #tpu.core_type<tc>} {
    %c0 = arith.constant 0 : index
    %c0_0 = arith.constant 0 : index
    %0 = vector.load %arg0[%c0, %c0_0] : memref<8x16xf32, #tpu.memory_space<vmem>>, vector<8x16xf32>
    %c0_1 = arith.constant 0 : index
    %c0_2 = arith.constant 0 : index
    %1 = vector.load %arg1[%c0_1, %c0_2] : memref<16x128xf32, #tpu.memory_space<vmem>>, vector<16x128xf32>
    %cst = arith.constant dense<0.000000e+00> : vector<8x128xf32>
    %2 = tpu.matmul %0, %1, %cst {dimension_numbers = #tpu.dot_dimension_numbers<[1], [0], [0], [1], [0, 0, 1, 1], [], []>} : vector<8x16xf32>, vector<16x128xf32>, vector<8x128xf32> -> vector<8x128xf32>
    %c0_3 = arith.constant 0 : index
    %c0_4 = arith.constant 0 : index
    %3 = vector.load %arg3[%c0_3, %c0_4] : memref<1x128xf32, #tpu.memory_space<vmem>>, vector<1x128xf32>
    %4 = vector.broadcast %3 : vector<1x128xf32> to vector<8x128xf32>
    %5 = arith.addf %2, %4 : vector<8x128xf32>
    %c0_5 = arith.constant 0 : index
    %c0_6 = arith.constant 0 : index
    %6 = vector.load %arg5[%c0_5, %c0_6] : memref<8x128xf32, #tpu.memory_space<vmem>>, vector<8x128xf32>
    tpu.vector_store %arg5[%c0_5, %c0_6], %5 {strides = array<i32>} : memref<8x128xf32, #tpu.memory_space<vmem>>, vector<8x128xf32>,
    %c0_7 = arith.constant 0 : index
    %c0_8 = arith.constant 0 : index
    %7 = vector.load %arg2[%c0_7, %c0_8] : memref<32x128xf32, #tpu.memory_space<vmem>>, vector<32x128xf32>
    %cst_9 = arith.constant 0.000000e+00 : f32
    %8 = vector.broadcast %cst_9 : f32 to vector<1x32xf32>
    %cst_10 = arith.constant 0.000000e+00 : f32
    %9 = vector.broadcast %cst_10 : f32 to vector<1x32xf32>
    %c0_i32 = arith.constant 0 : i32
    %10 = arith.index_cast %c0_i32 : i32 to index
    %c0_11 = arith.constant 0 : index
    %11 = vector.load %arg5[%10, %c0_11] : memref<8x128xf32, #tpu.memory_space<vmem>>, vector<1x128xf32>
    %cst_12 = arith.constant dense<0.000000e+00> : vector<1x128xf32>
    %12 = tpu.matmul %8, %7, %cst_12 {dimension_numbers = #tpu.dot_dimension_numbers<[1], [0], [0], [1], [0, 0, 1, 1], [], []>} : vector<1x32xf32>, vector<32x128xf32>, vector<1x128xf32> -> vector<1x128xf32>
    %13 = arith.addf %11, %12 : vector<1x128xf32>
    %14 = arith.negf %13 : vector<1x128xf32>
    %15 = math.exp %14 : vector<1x128xf32>
    %cst_13 = arith.constant 1.000000e+00 : f32
    %16 = vector.broadcast %cst_13 : f32 to vector<1x128xf32>
    %17 = arith.addf %16, %15 : vector<1x128xf32>
    %18 = arith.divf %16, %17 : vector<1x128xf32>
    %19 = math.tanh %13 : vector<1x128xf32>
    %20 = vector.extract_strided_slice %18 {offsets = [0, 0], sizes = [1, 32], strides = [1, 1]} : vector<1x128xf32> to vector<1x32xf32>
    %21 = vector.extract_strided_slice %18 {offsets = [0, 32], sizes = [1, 32], strides = [1, 1]} : vector<1x128xf32> to vector<1x32xf32>
    %22 = vector.extract_strided_slice %19 {offsets = [0, 64], sizes = [1, 32], strides = [1, 1]} : vector<1x128xf32> to vector<1x32xf32>
    %23 = vector.extract_strided_slice %18 {offsets = [0, 96], sizes = [1, 32], strides = [1, 1]} : vector<1x128xf32> to vector<1x32xf32>
    %24 = arith.mulf %21, %9 : vector<1x32xf32>
    %25 = arith.mulf %20, %22 : vector<1x32xf32>
    %26 = arith.addf %24, %25 : vector<1x32xf32>
    %27 = math.tanh %26 : vector<1x32xf32>
    %28 = arith.mulf %23, %27 : vector<1x32xf32>
    %c1_i32 = arith.constant 1 : i32
    %29 = arith.index_cast %c1_i32 : i32 to index
    %c0_14 = arith.constant 0 : index
    %30 = vector.load %arg5[%29, %c0_14] : memref<8x128xf32, #tpu.memory_space<vmem>>, vector<1x128xf32>
    %cst_15 = arith.constant dense<0.000000e+00> : vector<1x128xf32>
    %31 = tpu.matmul %28, %7, %cst_15 {dimension_numbers = #tpu.dot_dimension_numbers<[1], [0], [0], [1], [0, 0, 1, 1], [], []>} : vector<1x32xf32>, vector<32x128xf32>, vector<1x128xf32> -> vector<1x128xf32>
    %32 = arith.addf %30, %31 : vector<1x128xf32>
    %33 = arith.negf %32 : vector<1x128xf32>
    %34 = math.exp %33 : vector<1x128xf32>
    %cst_16 = arith.constant 1.000000e+00 : f32
    %35 = vector.broadcast %cst_16 : f32 to vector<1x128xf32>
    %36 = arith.addf %35, %34 : vector<1x128xf32>
    %37 = arith.divf %35, %36 : vector<1x128xf32>
    %38 = math.tanh %32 : vector<1x128xf32>
    %39 = vector.extract_strided_slice %37 {offsets = [0, 0], sizes = [1, 32], strides = [1, 1]} : vector<1x128xf32> to vector<1x32xf32>
    %40 = vector.extract_strided_slice %37 {offsets = [0, 32], sizes = [1, 32], strides = [1, 1]} : vector<1x128xf32> to vector<1x32xf32>
    %41 = vector.extract_strided_slice %38 {offsets = [0, 64], sizes = [1, 32], strides = [1, 1]} : vector<1x128xf32> to vector<1x32xf32>
    %42 = vector.extract_strided_slice %37 {offsets = [0, 96], sizes = [1, 32], strides = [1, 1]} : vector<1x128xf32> to vector<1x32xf32>
    %43 = arith.mulf %40, %26 : vector<1x32xf32>
    %44 = arith.mulf %39, %41 : vector<1x32xf32>
    %45 = arith.addf %43, %44 : vector<1x32xf32>
    %46 = math.tanh %45 : vector<1x32xf32>
    %47 = arith.mulf %42, %46 : vector<1x32xf32>
    %c2_i32 = arith.constant 2 : i32
    %48 = arith.index_cast %c2_i32 : i32 to index
    %c0_17 = arith.constant 0 : index
    %49 = vector.load %arg5[%48, %c0_17] : memref<8x128xf32, #tpu.memory_space<vmem>>, vector<1x128xf32>
    %cst_18 = arith.constant dense<0.000000e+00> : vector<1x128xf32>
    %50 = tpu.matmul %47, %7, %cst_18 {dimension_numbers = #tpu.dot_dimension_numbers<[1], [0], [0], [1], [0, 0, 1, 1], [], []>} : vector<1x32xf32>, vector<32x128xf32>, vector<1x128xf32> -> vector<1x128xf32>
    %51 = arith.addf %49, %50 : vector<1x128xf32>
    %52 = arith.negf %51 : vector<1x128xf32>
    %53 = math.exp %52 : vector<1x128xf32>
    %cst_19 = arith.constant 1.000000e+00 : f32
    %54 = vector.broadcast %cst_19 : f32 to vector<1x128xf32>
    %55 = arith.addf %54, %53 : vector<1x128xf32>
    %56 = arith.divf %54, %55 : vector<1x128xf32>
    %57 = math.tanh %51 : vector<1x128xf32>
    %58 = vector.extract_strided_slice %56 {offsets = [0, 0], sizes = [1, 32], strides = [1, 1]} : vector<1x128xf32> to vector<1x32xf32>
    %59 = vector.extract_strided_slice %56 {offsets = [0, 32], sizes = [1, 32], strides = [1, 1]} : vector<1x128xf32> to vector<1x32xf32>
    %60 = vector.extract_strided_slice %57 {offsets = [0, 64], sizes = [1, 32], strides = [1, 1]} : vector<1x128xf32> to vector<1x32xf32>
    %61 = vector.extract_strided_slice %56 {offsets = [0, 96], sizes = [1, 32], strides = [1, 1]} : vector<1x128xf32> to vector<1x32xf32>
    %62 = arith.mulf %59, %45 : vector<1x32xf32>
    %63 = arith.mulf %58, %60 : vector<1x32xf32>
    %64 = arith.addf %62, %63 : vector<1x32xf32>
    %65 = math.tanh %64 : vector<1x32xf32>
    %66 = arith.mulf %61, %65 : vector<1x32xf32>
    %c3_i32 = arith.constant 3 : i32
    %67 = arith.index_cast %c3_i32 : i32 to index
    %c0_20 = arith.constant 0 : index
    %68 = vector.load %arg5[%67, %c0_20] : memref<8x128xf32, #tpu.memory_space<vmem>>, vector<1x128xf32>
    %cst_21 = arith.constant dense<0.000000e+00> : vector<1x128xf32>
    %69 = tpu.matmul %66, %7, %cst_21 {dimension_numbers = #tpu.dot_dimension_numbers<[1], [0], [0], [1], [0, 0, 1, 1], [], []>} : vector<1x32xf32>, vector<32x128xf32>, vector<1x128xf32> -> vector<1x128xf32>
    %70 = arith.addf %68, %69 : vector<1x128xf32>
    %71 = arith.negf %70 : vector<1x128xf32>
    %72 = math.exp %71 : vector<1x128xf32>
    %cst_22 = arith.constant 1.000000e+00 : f32
    %73 = vector.broadcast %cst_22 : f32 to vector<1x128xf32>
    %74 = arith.addf %73, %72 : vector<1x128xf32>
    %75 = arith.divf %73, %74 : vector<1x128xf32>
    %76 = math.tanh %70 : vector<1x128xf32>
    %77 = vector.extract_strided_slice %75 {offsets = [0, 0], sizes = [1, 32], strides = [1, 1]} : vector<1x128xf32> to vector<1x32xf32>
    %78 = vector.extract_strided_slice %75 {offsets = [0, 32], sizes = [1, 32], strides = [1, 1]} : vector<1x128xf32> to vector<1x32xf32>
    %79 = vector.extract_strided_slice %76 {offsets = [0, 64], sizes = [1, 32], strides = [1, 1]} : vector<1x128xf32> to vector<1x32xf32>
    %80 = vector.extract_strided_slice %75 {offsets = [0, 96], sizes = [1, 32], strides = [1, 1]} : vector<1x128xf32> to vector<1x32xf32>
    %81 = arith.mulf %78, %64 : vector<1x32xf32>
    %82 = arith.mulf %77, %79 : vector<1x32xf32>
    %83 = arith.addf %81, %82 : vector<1x32xf32>
    %84 = math.tanh %83 : vector<1x32xf32>
    %85 = arith.mulf %80, %84 : vector<1x32xf32>
    %c4_i32 = arith.constant 4 : i32
    %86 = arith.index_cast %c4_i32 : i32 to index
    %c0_23 = arith.constant 0 : index
    %87 = vector.load %arg5[%86, %c0_23] : memref<8x128xf32, #tpu.memory_space<vmem>>, vector<1x128xf32>
    %cst_24 = arith.constant dense<0.000000e+00> : vector<1x128xf32>
    %88 = tpu.matmul %85, %7, %cst_24 {dimension_numbers = #tpu.dot_dimension_numbers<[1], [0], [0], [1], [0, 0, 1, 1], [], []>} : vector<1x32xf32>, vector<32x128xf32>, vector<1x128xf32> -> vector<1x128xf32>
    %89 = arith.addf %87, %88 : vector<1x128xf32>
    %90 = arith.negf %89 : vector<1x128xf32>
    %91 = math.exp %90 : vector<1x128xf32>
    %cst_25 = arith.constant 1.000000e+00 : f32
    %92 = vector.broadcast %cst_25 : f32 to vector<1x128xf32>
    %93 = arith.addf %92, %91 : vector<1x128xf32>
    %94 = arith.divf %92, %93 : vector<1x128xf32>
    %95 = math.tanh %89 : vector<1x128xf32>
    %96 = vector.extract_strided_slice %94 {offsets = [0, 0], sizes = [1, 32], strides = [1, 1]} : vector<1x128xf32> to vector<1x32xf32>
    %97 = vector.extract_strided_slice %94 {offsets = [0, 32], sizes = [1, 32], strides = [1, 1]} : vector<1x128xf32> to vector<1x32xf32>
    %98 = vector.extract_strided_slice %95 {offsets = [0, 64], sizes = [1, 32], strides = [1, 1]} : vector<1x128xf32> to vector<1x32xf32>
    %99 = vector.extract_strided_slice %94 {offsets = [0, 96], sizes = [1, 32], strides = [1, 1]} : vector<1x128xf32> to vector<1x32xf32>
    %100 = arith.mulf %97, %83 : vector<1x32xf32>
    %101 = arith.mulf %96, %98 : vector<1x32xf32>
    %102 = arith.addf %100, %101 : vector<1x32xf32>
    %103 = math.tanh %102 : vector<1x32xf32>
    %104 = arith.mulf %99, %103 : vector<1x32xf32>
    %c5_i32 = arith.constant 5 : i32
    %105 = arith.index_cast %c5_i32 : i32 to index
    %c0_26 = arith.constant 0 : index
    %106 = vector.load %arg5[%105, %c0_26] : memref<8x128xf32, #tpu.memory_space<vmem>>, vector<1x128xf32>
    %cst_27 = arith.constant dense<0.000000e+00> : vector<1x128xf32>
    %107 = tpu.matmul %104, %7, %cst_27 {dimension_numbers = #tpu.dot_dimension_numbers<[1], [0], [0], [1], [0, 0, 1, 1], [], []>} : vector<1x32xf32>, vector<32x128xf32>, vector<1x128xf32> -> vector<1x128xf32>
    %108 = arith.addf %106, %107 : vector<1x128xf32>
    %109 = arith.negf %108 : vector<1x128xf32>
    %110 = math.exp %109 : vector<1x128xf32>
    %cst_28 = arith.constant 1.000000e+00 : f32
    %111 = vector.broadcast %cst_28 : f32 to vector<1x128xf32>
    %112 = arith.addf %111, %110 : vector<1x128xf32>
    %113 = arith.divf %111, %112 : vector<1x128xf32>
    %114 = math.tanh %108 : vector<1x128xf32>
    %115 = vector.extract_strided_slice %113 {offsets = [0, 0], sizes = [1, 32], strides = [1, 1]} : vector<1x128xf32> to vector<1x32xf32>
    %116 = vector.extract_strided_slice %113 {offsets = [0, 32], sizes = [1, 32], strides = [1, 1]} : vector<1x128xf32> to vector<1x32xf32>
    %117 = vector.extract_strided_slice %114 {offsets = [0, 64], sizes = [1, 32], strides = [1, 1]} : vector<1x128xf32> to vector<1x32xf32>
    %118 = vector.extract_strided_slice %113 {offsets = [0, 96], sizes = [1, 32], strides = [1, 1]} : vector<1x128xf32> to vector<1x32xf32>
    %119 = arith.mulf %116, %102 : vector<1x32xf32>
    %120 = arith.mulf %115, %117 : vector<1x32xf32>
    %121 = arith.addf %119, %120 : vector<1x32xf32>
    %122 = math.tanh %121 : vector<1x32xf32>
    %123 = arith.mulf %118, %122 : vector<1x32xf32>
    %c6_i32 = arith.constant 6 : i32
    %124 = arith.index_cast %c6_i32 : i32 to index
    %c0_29 = arith.constant 0 : index
    %125 = vector.load %arg5[%124, %c0_29] : memref<8x128xf32, #tpu.memory_space<vmem>>, vector<1x128xf32>
    %cst_30 = arith.constant dense<0.000000e+00> : vector<1x128xf32>
    %126 = tpu.matmul %123, %7, %cst_30 {dimension_numbers = #tpu.dot_dimension_numbers<[1], [0], [0], [1], [0, 0, 1, 1], [], []>} : vector<1x32xf32>, vector<32x128xf32>, vector<1x128xf32> -> vector<1x128xf32>
    %127 = arith.addf %125, %126 : vector<1x128xf32>
    %128 = arith.negf %127 : vector<1x128xf32>
    %129 = math.exp %128 : vector<1x128xf32>
    %cst_31 = arith.constant 1.000000e+00 : f32
    %130 = vector.broadcast %cst_31 : f32 to vector<1x128xf32>
    %131 = arith.addf %130, %129 : vector<1x128xf32>
    %132 = arith.divf %130, %131 : vector<1x128xf32>
    %133 = math.tanh %127 : vector<1x128xf32>
    %134 = vector.extract_strided_slice %132 {offsets = [0, 0], sizes = [1, 32], strides = [1, 1]} : vector<1x128xf32> to vector<1x32xf32>
    %135 = vector.extract_strided_slice %132 {offsets = [0, 32], sizes = [1, 32], strides = [1, 1]} : vector<1x128xf32> to vector<1x32xf32>
    %136 = vector.extract_strided_slice %133 {offsets = [0, 64], sizes = [1, 32], strides = [1, 1]} : vector<1x128xf32> to vector<1x32xf32>
    %137 = vector.extract_strided_slice %132 {offsets = [0, 96], sizes = [1, 32], strides = [1, 1]} : vector<1x128xf32> to vector<1x32xf32>
    %138 = arith.mulf %135, %121 : vector<1x32xf32>
    %139 = arith.mulf %134, %136 : vector<1x32xf32>
    %140 = arith.addf %138, %139 : vector<1x32xf32>
    %141 = math.tanh %140 : vector<1x32xf32>
    %142 = arith.mulf %137, %141 : vector<1x32xf32>
    %c7_i32 = arith.constant 7 : i32
    %143 = arith.index_cast %c7_i32 : i32 to index
    %c0_32 = arith.constant 0 : index
    %144 = vector.load %arg5[%143, %c0_32] : memref<8x128xf32, #tpu.memory_space<vmem>>, vector<1x128xf32>
    %cst_33 = arith.constant dense<0.000000e+00> : vector<1x128xf32>
    %145 = tpu.matmul %142, %7, %cst_33 {dimension_numbers = #tpu.dot_dimension_numbers<[1], [0], [0], [1], [0, 0, 1, 1], [], []>} : vector<1x32xf32>, vector<32x128xf32>, vector<1x128xf32> -> vector<1x128xf32>
    %146 = arith.addf %144, %145 : vector<1x128xf32>
    %147 = arith.negf %146 : vector<1x128xf32>
    %148 = math.exp %147 : vector<1x128xf32>
    %cst_34 = arith.constant 1.000000e+00 : f32
    %149 = vector.broadcast %cst_34 : f32 to vector<1x128xf32>
    %150 = arith.addf %149, %148 : vector<1x128xf32>
    %151 = arith.divf %149, %150 : vector<1x128xf32>
    %152 = math.tanh %146 : vector<1x128xf32>
    %153 = vector.extract_strided_slice %151 {offsets = [0, 0], sizes = [1, 32], strides = [1, 1]} : vector<1x128xf32> to vector<1x32xf32>
    %154 = vector.extract_strided_slice %151 {offsets = [0, 32], sizes = [1, 32], strides = [1, 1]} : vector<1x128xf32> to vector<1x32xf32>
    %155 = vector.extract_strided_slice %152 {offsets = [0, 64], sizes = [1, 32], strides = [1, 1]} : vector<1x128xf32> to vector<1x32xf32>
    %156 = vector.extract_strided_slice %151 {offsets = [0, 96], sizes = [1, 32], strides = [1, 1]} : vector<1x128xf32> to vector<1x32xf32>
    %157 = arith.mulf %154, %140 : vector<1x32xf32>
    %158 = arith.mulf %153, %155 : vector<1x32xf32>
    %159 = arith.addf %157, %158 : vector<1x32xf32>
    %160 = math.tanh %159 : vector<1x32xf32>
    %161 = arith.mulf %156, %160 : vector<1x32xf32>
    %c8_i32 = arith.constant 8 : i32
    %cst_35 = arith.constant dense<0xFF800000> : vector<1xf32>
    %162 = vector.multi_reduction <maximumf>, %161, %cst_35 [1] : vector<1x32xf32> to vector<1xf32>
    %163 = vector.shape_cast %162 : vector<1xf32> to vector<1x1xf32>
    %164 = vector.broadcast %163 : vector<1x1xf32> to vector<1x32xf32>
    %165 = arith.subf %161, %164 : vector<1x32xf32>
    %166 = math.exp %165 : vector<1x32xf32>
    %cst_36 = arith.constant dense<0.000000e+00> : vector<1xf32>
    %167 = vector.multi_reduction <add>, %166, %cst_36 [1] : vector<1x32xf32> to vector<1xf32>
    %168 = vector.shape_cast %167 : vector<1xf32> to vector<1x1xf32>
    %169 = vector.broadcast %168 : vector<1x1xf32> to vector<1x32xf32>
    %170 = arith.divf %166, %169 : vector<1x32xf32>
    %c0_37 = arith.constant 0 : index
    %c0_38 = arith.constant 0 : index
    %171 = vector.load %arg4[%c0_37, %c0_38] : memref<1x32xf32, #tpu.memory_space<vmem>>, vector<1x32xf32>
    tpu.vector_store %arg4[%c0_37, %c0_38], %170 {strides = array<i32>} : memref<1x32xf32, #tpu.memory_space<vmem>>, vector<1x32xf32>,
    return
  }
}

</mosaic_0001>

<bundles_post_ra>
// kernel: tpu_custom_call.1
= control target key start
LH: loop header
LB: loop body
LE: loop exit
PB: predicated region body
PF: predicated region fallthrough
CT: control target
= control target key end

     0   :  { %9 = vsyncpa [#allocation4], 0  ;;  %s1559_s0 = inlined_call_operand.hbm [shape: f32[8,16], index: 0, kind: input, shape index: {}]   ;;  %s1560_s1 = inlined_call_operand.hbm [shape: f32[16,128], index: 1, kind: input, shape index: {}]   ;;  %s1561_s2 = inlined_call_operand.hbm [shape: f32[32,128], index: 2, kind: input, shape index: {}]   ;;  %s1562_s3 = inlined_call_operand.vmem [shape: f32[1,128], index: 3, kind: input, shape index: {}]   ;;  %s1563_s4 = inlined_call_operand.hbm [shape: f32[1,32], index: 4, kind: output, shape index: {}]  }
   0x1   :  { %10 = vsyncpa [#allocation7], 0 }
   0x2   :  { %11 = vsyncpa [#allocation5], 0  ;;  %s1370_s15 = smov [#allocation6]   ;;  %s1276_s19 = scalar_lea.hbm %s1560_s1, 256 }
   0x3   :  { %s27_s16 = sshll.u32 %s1370_s15, 4  ;;  %p1277_p0 = scmp.ne.s32.totalorder %s1560_s1, %s1276_s19  ;;  %s28_s16 = int_to_ptr.vmem [resolvable:$true] %s27_s16 }
   0x4   :  { %p1280_p1 = scmp.lt.u32.totalorder %s1276_s19, %s1560_s1 }
   0x6   :  { %p1282_p2 = pnand %p1280_p1, %p1277_p0 }
   0x8   :  { %1285 = shalt.err (!%p1282_p2)
}
   0x9   :  { %s1286_s24 = scalar_lea.vmem %s28_s16, 256  ;;  %p1291_p4 = scmp.lt.s32.totalorder %s28_s16, %s28_s16 }
   0xa   :  { %p1287_p3 = scmp.ne.s32.totalorder %s28_s16, %s1286_s24  ;;  %p1292_p5 = scmp.lt.s32.totalorder %s1286_s24, %s1286_s24 }
   0xc   :  { %p1293_p6 = por %p1292_p5, %p1291_p4 }
   0xe   :  { %p1294_p7 = pnand %p1293_p6, %p1287_p3 }
  0x10   :  { %1297 = shalt.err (!%p1294_p7)
}
  0x11   :  { %s1371_s25 = smov 128   ;;  %s1372_s26 = smov 8  }
  0x12   :  { %33 = dma.hbm_to_vmem [thread:$0]  %s1560_s1, 256, %s28_s16, [#allocation7], %s1371_s25, %s1371_s25, %s1372_s26  }
  0x13   :  { %s1373_s29 = smov [#allocation3]   ;;  %s1374_s5 = smov [#allocation8]  }
  0x14   :  { %s18_s30 = sshll.u32 %s1373_s29, 4  ;;  %s39_s6 = sshll.u32 %s1374_s5, 4  ;;  %s19_s30 = int_to_ptr.vmem [resolvable:$true] %s18_s30  ;;  %s40_s6 = int_to_ptr.vmem [resolvable:$true] %s39_s6 }
  0x15   :  { %s1298_s9 = scalar_lea.hbm %s1559_s0, 128 }
  0x16   :  { %p1299_p8 = scmp.ne.s32.totalorder %s1559_s0, %s1298_s9  ;;  %p1302_p9 = scmp.lt.u32.totalorder %s1298_s9, %s1559_s0 }
  0x18   :  { %p1304_p10 = pnand %p1302_p9, %p1299_p8 }
  0x1a   :  { %1307 = shalt.err (!%p1304_p10)
}
  0x1b   :  { %s1308_s1 = scalar_lea.vmem %s19_s30, 128  ;;  %p1313_p12 = scmp.lt.s32.totalorder %s19_s30, %s19_s30 }
  0x1c   :  { %p1309_p11 = scmp.ne.s32.totalorder %s19_s30, %s1308_s1  ;;  %p1314_p13 = scmp.lt.s32.totalorder %s1308_s1, %s1308_s1 }
  0x1e   :  { %p1315_p0 = por %p1314_p13, %p1313_p12 }
  0x20   :  { %p1316_p1 = pnand %p1315_p0, %p1309_p11 }
  0x22   :  { %1319 = shalt.err (!%p1316_p1)
}
  0x23   :  { %21 = dma.hbm_to_vmem [thread:$0]  %s1559_s0, 128, %s19_s30, [#allocation4]  }
  0x24   :  { %s1320_s18 = scalar_lea.hbm %s1561_s2, 512 }
  0x25   :  { %p1321_p2 = scmp.ne.s32.totalorder %s1561_s2, %s1320_s18  ;;  %p1324_p3 = scmp.lt.u32.totalorder %s1320_s18, %s1561_s2 }
  0x27   :  { %p1326_p4 = pnand %p1324_p3, %p1321_p2 }
  0x29   :  { %1329 = shalt.err (!%p1326_p4)
}
  0x2a   :  { %s1330_s23 = scalar_lea.vmem %s40_s6, 512  ;;  %p1335_p6 = scmp.lt.s32.totalorder %s40_s6, %s40_s6 }
  0x2b   :  { %p1331_p5 = scmp.ne.s32.totalorder %s40_s6, %s1330_s23  ;;  %p1336_p7 = scmp.lt.s32.totalorder %s1330_s23, %s1330_s23 }
  0x2d   :  { %p1337_p8 = por %p1336_p7, %p1335_p6 }
  0x2f   :  { %p1338_p9 = pnand %p1337_p8, %p1331_p5 }
  0x31   :  { %1341 = shalt.err (!%p1338_p9)
}
  0x32   :  { %45 = dma.hbm_to_vmem [thread:$0]  %s1561_s2, 512, %s40_s6, [#allocation7], %s1371_s25, %s1371_s25, %s1372_s26  }
  0x33   :  { %1364 = dma.done.wait [#allocation4], 128  }
  0x34   :  { %1365 = vsyncadd [#allocation4], 4294967168 }
  0x35   :  { %1366 = dma.done.wait [#allocation7], 768  }
  0x36   :  { %1367 = vsyncadd [#allocation7], 4294966528  ;;  %v1375_v0 = vmov 0.0|0.0   ;;  %vm1376_vm0 = vmmov 0   ;;  %v1377_v1 = vmov 0.0   ;;  %v58_v2 = vld [vmem:[#allocation6] sm:$0xff] }
  0x37   :  { %1146 = vmatprep.subr.bf16.mxu0 %v1375_v0  ;;  %1055 = vmatprep.mubr.msk.f32.mxu0 %vm1376_vm0, %v1377_v1  ;;  %v59_v3 = vld [vmem:[#allocation6 + $0x8] sm:$0xff]  ;;  %v142_v5 = vld [vmem:[#allocation8] sm:$0xff]  ;;  %v143_v6 = vld [vmem:[#allocation8 + $0x8] sm:$0xff]  ;;  %vm67_vm1 = vcmask 130048   ;;  %s1378_s26 = smov 64   ;;  %vm147_vm2 = vcmask 261120  }
  0x38   :  { %1149 = vmatprep.subr.bf16.mxu1 %v1375_v0  ;;  %1066 = vmatprep.mubr.msk.f32.mxu1 %vm1376_vm0, %v1377_v1  ;;  %v1147_v4 = vpack.c.bf16 %v59_v3, %v58_v2  ;;  %v144_v7 = vld [vmem:[#allocation8 + $0x10] sm:$0xff]  ;;  %v1454_v8 = vpack.c.bf16 %v143_v6, %v142_v5  ;;  %v145_v9 = vld [vmem:[#allocation8 + $0x18] sm:$0xff]  ;;  %v57_v10 = vld [vmem:[#allocation3] sm:$0xff]  ;;  %vm953_vm3 = vcmask 1041152   ;;  %vm964_vm4 = vcmask 253952   ;;  %s1380_s27 = smov [#allocation9]  }
  0x39   :  { %v1457_v11 = vpack.c.bf16 %v145_v9, %v144_v7  ;;  %v991_v12 = vld [vmem:[%s1562_s3] ss:$0 sm:$0xff]  ;;  %s1379_s3 = smov 32   ;;  %s981_s28 = sshll.u32 %s1380_s27, 4  ;;  %s982_s28 = int_to_ptr.vmem [resolvable:$true] %s981_s28 }
  0x3a   :  { %1148 = vmatpush3.bf16.msra.mxu0 %v1147_v4  ;;  %1151 = vmatpush3.bf16.msra.mxu1 %v1454_v8  ;;  %s1342_s29 = scalar_lea.vmem %s982_s28, 16  ;;  %s1346_s30 = scalar_lea.vmem %s982_s28, 32 }
  0x3b   :  { %1155 = vmatprep.subr.bf16.mxu0 %v1375_v0  ;;  %1152 = vmatprep.subr.bf16.mxu1 %v1375_v0  ;;  %p1343_p10 = scmp.ne.s32.totalorder %s982_s28, %s1342_s29  ;;  %p1347_p11 = scmp.lt.s32.totalorder %s982_s28, %s982_s28 }
  0x3c   :  { %p1348_p12 = scmp.lt.s32.totalorder %s1346_s30, %s1342_s29 }
  0x3d   :  { %1056 = vmatmul.mubr.msk.f32.vlgmr.msra.gmra.mrb[0].mxu0 %vm67_vm1, %v57_v10 }
  0x3e   :  { %1157 = vmatpush3.bf16.msra.mxu0 %v1454_v8  ;;  %1077 = vmatprep.mubr.msk.f32.mxu0 %vm1376_vm0, %v1377_v1  ;;  %p1349_p13 = por %p1348_p12, %p1347_p11 }
  0x3f   :  { %1154 = vmatpush3.bf16.msra.mxu1 %v1457_v11  ;;  %1158 = vmatprep.subr.bf16.mxu0 %v1375_v0 }
  0x40   :  { %1161 = vmatprep.subr.bf16.mxu1 %v1375_v0  ;;  %p1350_p0 = pnand %p1349_p13, %p1343_p10 }
  0x42   :  { %1067 = vmatmul.mubr.f32.vlgmr.msra.gmra.mrb[0].mxu1 %v1377_v1  ;;  %1160 = vmatpush3.bf16.msra.mxu0 %v1457_v11 }
  0x43   :  { %1163 = vmatpush3.bf16.msra.mxu1 %v1454_v8  ;;  %1088 = vmatprep.mubr.msk.f32.mxu1 %vm1376_vm0, %v1377_v1 }
  0x44   :  { %1164 = vmatprep.subr.bf16.mxu1 %v1375_v0  ;;  %1167 = vmatprep.subr.bf16.mxu0 %v1375_v0 }
  0x47   :  { %1166 = vmatpush3.bf16.msra.mxu1 %v1457_v11 }
  0x48   :  { %1173 = vmatprep.subr.bf16.mxu1 %v1375_v0 }
 0x110   :  { %v137_v13 = vpop.f32.mrb[0].mxu0 }
 0x111   :  { %v138_v14 = vadd.f32 %v991_v12, %v137_v13  ;;  %v1057_v15 = vpop.f32.mrb[1].mxu0 }
 0x113   :  { %141 = vst [vmem:[#allocation2] sm:$0xff] %v138_v14 }
 0x115   :  { %v217_v16 = vpop.f32.mrb[0].mxu1 }
 0x116   :  { %v1068_v17 = vpop.f32.mrb[1].mxu1 }
 0x11a   :  { %v146_v18 = vld [vmem:[#allocation2] sm:$0x1]  ;;  %v246_v34 = vld [vmem:[#allocation2 + $0x1] sm:$0x1]  ;;  %v347_v52 = vld [vmem:[#allocation2 + $0x2] sm:$0x1] }
 0x11b   :  { %v221_v19 = vadd.f32 %v217_v16, %v146_v18  ;;  %v448_v9 = vld [vmem:[#allocation2 + $0x3] sm:$0x1] }
 0x11d   :  { %1208 = vtanh.f32 %v221_v19  ;;  %v993_v21 = vmul.f32 -1.442695, %v221_v19 }
 0x11f   :  { %1210 = vpow2.f32 %v993_v21 }
 0x127   :  { %v1209_v20 = vpop.eup %1208 }
 0x128   :  { %231 = vrot.lane.b32.xlu0 %v1209_v20, %s1378_s26 }
 0x129   :  { %v1211_v22 = vpop.eup %1210 }
 0x12a   :  { %v225_v23 = vadd.f32 1.0, %v1211_v22 }
 0x12c   :  { %1212 = vrcp.f32 %v225_v23 }
 0x136   :  { %v1213_v24 = vpop.eup %1212 }
 0x137   :  { %v229_v27 = vmul.f32 0.0, %v1213_v24 }
 0x19a   :  { %v232_v25 = vpop.permute.xlu0 %231 }
 0x19b   :  { %v234_v26 = vmul.f32 %v1213_v24, %v232_v25 }
 0x19d   :  { %236 = vrot.lane.b32.xlu0 %v234_v26, %s1379_s3 }
 0x20f   :  { %v237_v28 = vpop.permute.xlu0 %236 }
 0x210   :  { %v239_v29 = vadd.f32 %v237_v28, %v229_v27  ;;  %v549_v28 = vld [vmem:[#allocation2 + $0x4] sm:$0x1] }
 0x212   :  { %1214 = vtanh.f32 %v239_v29 }
 0x21c   :  { %v1215_v30 = vpop.eup %1214 }
 0x21d   :  { %242 = vrot.lane.b32.xlu1 %v1215_v30, %s1378_s26 }
 0x28f   :  { %v243_v31 = vpop.permute.xlu1 %242 }
 0x290   :  { %v245_v32 = vmul.f32 %v1213_v24, %v243_v31 }
 0x292   :  { %248 = vrot.lane.b32.xlu1 %v245_v32, %s1379_s3 }
 0x304   :  { %v249_v33 = vpop.permute.xlu1 %248 }
 0x305   :  { %1078 = vmatmul.mubr.msk.f32.vlgmr.msra.gmra.mrb[2].mxu0 %vm147_vm2, %v249_v33 }
 0x306   :  { %1169 = vmatpush3.bf16.msra.mxu0 %v1454_v8  ;;  %1099 = vmatprep.mubr.msk.f32.mxu0 %vm1376_vm0, %v1377_v1 }
 0x307   :  { %1170 = vmatprep.subr.bf16.mxu0 %v1375_v0 }
 0x30a   :  { %1172 = vmatpush3.bf16.msra.mxu0 %v1457_v11 }
 0x30b   :  { %1179 = vmatprep.subr.bf16.mxu0 %v1375_v0 }
 0x3d8   :  { %v318_v35 = vpop.f32.mrb[2].mxu0 }
 0x3d9   :  { %v322_v36 = vadd.f32 %v318_v35, %v246_v34  ;;  %v1079_v37 = vpop.f32.mrb[3].mxu0 }
 0x3db   :  { %1216 = vtanh.f32 %v322_v36  ;;  %v995_v39 = vmul.f32 -1.442695, %v322_v36 }
 0x3dd   :  { %1218 = vpow2.f32 %v995_v39 }
 0x3e5   :  { %v1217_v38 = vpop.eup %1216 }
 0x3e6   :  { %332 = vrot.lane.b32.xlu0 %v1217_v38, %s1378_s26 }
 0x3e7   :  { %v1219_v40 = vpop.eup %1218 }
 0x3e8   :  { %v326_v41 = vadd.f32 1.0, %v1219_v40 }
 0x3ea   :  { %1220 = vrcp.f32 %v326_v41 }
 0x3f4   :  { %v1221_v42 = vpop.eup %1220 }
 0x3f5   :  { %v330_v45 = vmul.f32 %v1221_v42, %v239_v29 }
 0x458   :  { %v333_v43 = vpop.permute.xlu0 %332 }
 0x459   :  { %v335_v44 = vmul.f32 %v1221_v42, %v333_v43 }
 0x45b   :  { %337 = vrot.lane.b32.xlu1 %v335_v44, %s1379_s3 }
 0x4cd   :  { %v338_v46 = vpop.permute.xlu1 %337 }
 0x4ce   :  { %v340_v47 = vadd.f32 %v338_v46, %v330_v45  ;;  %v650_v46 = vld [vmem:[#allocation2 + $0x5] sm:$0x1] }
 0x4d0   :  { %1222 = vtanh.f32 %v340_v47 }
 0x4da   :  { %v1223_v48 = vpop.eup %1222 }
 0x4db   :  { %343 = vrot.lane.b32.xlu0 %v1223_v48, %s1378_s26 }
 0x54d   :  { %v344_v49 = vpop.permute.xlu0 %343 }
 0x54e   :  { %v346_v50 = vmul.f32 %v1221_v42, %v344_v49 }
 0x550   :  { %349 = vrot.lane.b32.xlu1 %v346_v50, %s1379_s3 }
 0x5c2   :  { %v350_v51 = vpop.permute.xlu1 %349 }
 0x5c3   :  { %1089 = vmatmul.mubr.msk.f32.vlgmr.msra.gmra.mrb[2].mxu1 %vm147_vm2, %v350_v51 }
 0x5c4   :  { %1175 = vmatpush3.bf16.msra.mxu1 %v1454_v8  ;;  %1110 = vmatprep.mubr.msk.f32.mxu1 %vm1376_vm0, %v1377_v1 }
 0x5c5   :  { %1176 = vmatprep.subr.bf16.mxu1 %v1375_v0 }
 0x5c8   :  { %1178 = vmatpush3.bf16.msra.mxu1 %v1457_v11 }
 0x5c9   :  { %1185 = vmatprep.subr.bf16.mxu1 %v1375_v0 }
 0x696   :  { %v419_v53 = vpop.f32.mrb[2].mxu1 }
 0x697   :  { %v423_v54 = vadd.f32 %v419_v53, %v347_v52  ;;  %v1090_v55 = vpop.f32.mrb[3].mxu1 }
 0x699   :  { %1224 = vtanh.f32 %v423_v54  ;;  %v997_v57 = vmul.f32 -1.442695, %v423_v54 }
 0x69b   :  { %1226 = vpow2.f32 %v997_v57 }
 0x6a3   :  { %v1225_v56 = vpop.eup %1224 }
 0x6a4   :  { %433 = vrot.lane.b32.xlu0 %v1225_v56, %s1378_s26 }
 0x6a5   :  { %v1227_v58 = vpop.eup %1226 }
 0x6a6   :  { %v427_v59 = vadd.f32 1.0, %v1227_v58 }
 0x6a8   :  { %1228 = vrcp.f32 %v427_v59 }
 0x6b2   :  { %v1229_v60 = vpop.eup %1228 }
 0x6b3   :  { %v431_v63 = vmul.f32 %v1229_v60, %v340_v47 }
 0x716   :  { %v434_v61 = vpop.permute.xlu0 %433 }
 0x717   :  { %v436_v62 = vmul.f32 %v1229_v60, %v434_v61 }
 0x719   :  { %438 = vrot.lane.b32.xlu1 %v436_v62, %s1379_s3 }
 0x78b   :  { %v439_v2 = vpop.permute.xlu1 %438 }
 0x78c   :  { %v441_v3 = vadd.f32 %v439_v2, %v431_v63 }
 0x78e   :  { %1230 = vtanh.f32 %v441_v3 }
 0x798   :  { %v1231_v4 = vpop.eup %1230 }
 0x799   :  { %444 = vrot.lane.b32.xlu0 %v1231_v4, %s1378_s26 }
 0x80b   :  { %v445_v5 = vpop.permute.xlu0 %444 }
 0x80c   :  { %v447_v6 = vmul.f32 %v1229_v60, %v445_v5  ;;  %v751_v60 = vld [vmem:[#allocation2 + $0x6] sm:$0x1] }
 0x80e   :  { %450 = vrot.lane.b32.xlu1 %v447_v6, %s1379_s3 }
 0x880   :  { %v451_v7 = vpop.permute.xlu1 %450 }
 0x881   :  { %1100 = vmatmul.mubr.msk.f32.vlgmr.msra.gmra.mrb[4].mxu0 %vm147_vm2, %v451_v7 }
 0x882   :  { %1181 = vmatpush3.bf16.msra.mxu0 %v1454_v8  ;;  %1121 = vmatprep.mubr.msk.f32.mxu0 %vm1376_vm0, %v1377_v1 }
 0x883   :  { %1182 = vmatprep.subr.bf16.mxu0 %v1375_v0 }
 0x886   :  { %1184 = vmatpush3.bf16.msra.mxu0 %v1457_v11 }
 0x887   :  { %1191 = vmatprep.subr.bf16.mxu0 %v1375_v0 }
 0x954   :  { %v520_v10 = vpop.f32.mrb[4].mxu0 }
 0x955   :  { %v524_v12 = vadd.f32 %v520_v10, %v448_v9  ;;  %v1101_v13 = vpop.f32.mrb[5].mxu0 }
 0x957   :  { %1232 = vtanh.f32 %v524_v12  ;;  %v999_v15 = vmul.f32 -1.442695, %v524_v12 }
 0x959   :  { %1234 = vpow2.f32 %v999_v15 }
 0x961   :  { %v1233_v14 = vpop.eup %1232 }
 0x962   :  { %534 = vrot.lane.b32.xlu0 %v1233_v14, %s1378_s26 }
 0x963   :  { %v1235_v16 = vpop.eup %1234 }
 0x964   :  { %v528_v17 = vadd.f32 1.0, %v1235_v16 }
 0x966   :  { %1236 = vrcp.f32 %v528_v17 }
 0x970   :  { %v1237_v18 = vpop.eup %1236 }
 0x971   :  { %v532_v21 = vmul.f32 %v1237_v18, %v441_v3 }
 0x9d4   :  { %v535_v19 = vpop.permute.xlu0 %534 }
 0x9d5   :  { %v537_v20 = vmul.f32 %v1237_v18, %v535_v19 }
 0x9d7   :  { %539 = vrot.lane.b32.xlu1 %v537_v20, %s1379_s3 }
 0xa49   :  { %v540_v22 = vpop.permute.xlu1 %539 }
 0xa4a   :  { %v542_v23 = vadd.f32 %v540_v22, %v532_v21 }
 0xa4c   :  { %1238 = vtanh.f32 %v542_v23 }
 0xa56   :  { %v1239_v24 = vpop.eup %1238 }
 0xa57   :  { %545 = vrot.lane.b32.xlu0 %v1239_v24, %s1378_s26 }
 0xac9   :  { %v546_v25 = vpop.permute.xlu0 %545 }
 0xaca   :  { %v548_v26 = vmul.f32 %v1237_v18, %v546_v25  ;;  %v852_v18 = vld [vmem:[#allocation2 + $0x7] sm:$0x1] }
 0xacc   :  { %551 = vrot.lane.b32.xlu1 %v548_v26, %s1379_s3 }
 0xb3e   :  { %v552_v27 = vpop.permute.xlu1 %551 }
 0xb3f   :  { %1111 = vmatmul.mubr.msk.f32.vlgmr.msra.gmra.mrb[4].mxu1 %vm147_vm2, %v552_v27 }
 0xb40   :  { %1187 = vmatpush3.bf16.msra.mxu1 %v1454_v8  ;;  %1132 = vmatprep.mubr.msk.f32.mxu1 %vm1376_vm0, %v1377_v1 }
 0xb41   :  { %1188 = vmatprep.subr.bf16.mxu1 %v1375_v0 }
 0xb44   :  { %1190 = vmatpush3.bf16.msra.mxu1 %v1457_v11 }
 0xc12   :  { %v621_v29 = vpop.f32.mrb[4].mxu1 }
 0xc13   :  { %v625_v30 = vadd.f32 %v621_v29, %v549_v28  ;;  %v1112_v31 = vpop.f32.mrb[5].mxu1 }
 0xc15   :  { %1240 = vtanh.f32 %v625_v30  ;;  %v1001_v33 = vmul.f32 -1.442695, %v625_v30 }
 0xc17   :  { %1242 = vpow2.f32 %v1001_v33 }
 0xc1f   :  { %v1241_v32 = vpop.eup %1240 }
 0xc20   :  { %635 = vrot.lane.b32.xlu0 %v1241_v32, %s1378_s26 }
 0xc21   :  { %v1243_v34 = vpop.eup %1242 }
 0xc22   :  { %v629_v35 = vadd.f32 1.0, %v1243_v34 }
 0xc24   :  { %1244 = vrcp.f32 %v629_v35 }
 0xc2e   :  { %v1245_v36 = vpop.eup %1244 }
 0xc2f   :  { %v633_v39 = vmul.f32 %v1245_v36, %v542_v23 }
 0xc92   :  { %v636_v37 = vpop.permute.xlu0 %635 }
 0xc93   :  { %v638_v38 = vmul.f32 %v1245_v36, %v636_v37 }
 0xc95   :  { %640 = vrot.lane.b32.xlu1 %v638_v38, %s1379_s3 }
 0xd07   :  { %v641_v40 = vpop.permute.xlu1 %640 }
 0xd08   :  { %v643_v41 = vadd.f32 %v641_v40, %v633_v39 }
 0xd0a   :  { %1246 = vtanh.f32 %v643_v41 }
 0xd14   :  { %v1247_v42 = vpop.eup %1246 }
 0xd15   :  { %646 = vrot.lane.b32.xlu0 %v1247_v42, %s1378_s26 }
 0xd87   :  { %v647_v43 = vpop.permute.xlu0 %646 }
 0xd88   :  { %v649_v44 = vmul.f32 %v1245_v36, %v647_v43 }
 0xd8a   :  { %652 = vrot.lane.b32.xlu1 %v649_v44, %s1379_s3 }
 0xdfc   :  { %v653_v45 = vpop.permute.xlu1 %652 }
 0xdfd   :  { %1122 = vmatmul.mubr.msk.f32.vlgmr.msra.gmra.mrb[6].mxu0 %vm147_vm2, %v653_v45 }
 0xdfe   :  { %1193 = vmatpush3.bf16.msra.mxu0 %v1454_v8  ;;  %1143 = vmatprep.mubr.msk.f32.mxu0 %vm1376_vm0, %v1377_v1 }
 0xdff   :  { %1194 = vmatprep.subr.bf16.mxu0 %v1375_v0 }
 0xe02   :  { %1196 = vmatpush3.bf16.msra.mxu0 %v1457_v11 }
 0xed0   :  { %v722_v47 = vpop.f32.mrb[6].mxu0 }
 0xed1   :  { %v726_v48 = vadd.f32 %v722_v47, %v650_v46  ;;  %v1123_v49 = vpop.f32.mrb[7].mxu0 }
 0xed3   :  { %1248 = vtanh.f32 %v726_v48  ;;  %v1003_v51 = vmul.f32 -1.442695, %v726_v48 }
 0xed5   :  { %1250 = vpow2.f32 %v1003_v51 }
 0xedd   :  { %v1249_v50 = vpop.eup %1248 }
 0xede   :  { %736 = vrot.lane.b32.xlu0 %v1249_v50, %s1378_s26 }
 0xedf   :  { %v1251_v52 = vpop.eup %1250 }
 0xee0   :  { %v730_v53 = vadd.f32 1.0, %v1251_v52 }
 0xee2   :  { %1252 = vrcp.f32 %v730_v53 }
 0xeec   :  { %v1253_v8 = vpop.eup %1252 }
 0xeed   :  { %v734_v0 = vmul.f32 %v1253_v8, %v643_v41 }
 0xf50   :  { %v737_v54 = vpop.permute.xlu0 %736 }
 0xf51   :  { %v739_v1 = vmul.f32 %v1253_v8, %v737_v54 }
 0xf53   :  { %741 = vrot.lane.b32.xlu1 %v739_v1, %s1379_s3 }
 0xfc5   :  { %v742_v11 = vpop.permute.xlu1 %741 }
 0xfc6   :  { %v744_v55 = vadd.f32 %v742_v11, %v734_v0 }
 0xfc8   :  { %1254 = vtanh.f32 %v744_v55 }
 0xfd2   :  { %v1255_v56 = vpop.eup %1254 }
 0xfd3   :  { %747 = vrot.lane.b32.xlu0 %v1255_v56, %s1378_s26 }
0x1045   :  { %v748_v57 = vpop.permute.xlu0 %747 }
0x1046   :  { %v750_v58 = vmul.f32 %v1253_v8, %v748_v57 }
0x1048   :  { %753 = vrot.lane.b32.xlu1 %v750_v58, %s1379_s3 }
0x10ba   :  { %v754_v59 = vpop.permute.xlu1 %753 }
0x10bb   :  { %1133 = vmatmul.mubr.msk.f32.vlgmr.msra.gmra.mrb[6].mxu1 %vm147_vm2, %v754_v59 }
0x118e   :  { %v823_v61 = vpop.f32.mrb[6].mxu1 }
0x118f   :  { %v827_v62 = vadd.f32 %v823_v61, %v751_v60  ;;  %v1134_v63 = vpop.f32.mrb[7].mxu1 }
0x1191   :  { %1256 = vtanh.f32 %v827_v62  ;;  %v1005_v3 = vmul.f32 -1.442695, %v827_v62 }
0x1193   :  { %1258 = vpow2.f32 %v1005_v3 }
0x119b   :  { %v1257_v2 = vpop.eup %1256 }
0x119c   :  { %837 = vrot.lane.b32.xlu0 %v1257_v2, %s1378_s26 }
0x119d   :  { %v1259_v4 = vpop.eup %1258 }
0x119e   :  { %v831_v5 = vadd.f32 1.0, %v1259_v4 }
0x11a0   :  { %1260 = vrcp.f32 %v831_v5 }
0x11aa   :  { %v1261_v6 = vpop.eup %1260 }
0x11ab   :  { %v835_v10 = vmul.f32 %v1261_v6, %v744_v55 }
0x120e   :  { %v838_v7 = vpop.permute.xlu0 %837 }
0x120f   :  { %v840_v9 = vmul.f32 %v1261_v6, %v838_v7 }
0x1211   :  { %842 = vrot.lane.b32.xlu1 %v840_v9, %s1379_s3 }
0x1283   :  { %v843_v12 = vpop.permute.xlu1 %842 }
0x1284   :  { %v845_v13 = vadd.f32 %v843_v12, %v835_v10 }
0x1286   :  { %1262 = vtanh.f32 %v845_v13 }
0x1290   :  { %v1263_v14 = vpop.eup %1262 }
0x1291   :  { %848 = vrot.lane.b32.xlu0 %v1263_v14, %s1378_s26 }
0x1303   :  { %v849_v15 = vpop.permute.xlu0 %848 }
0x1304   :  { %v851_v16 = vmul.f32 %v1261_v6, %v849_v15 }
0x1306   :  { %854 = vrot.lane.b32.xlu1 %v851_v16, %s1379_s3 }
0x1378   :  { %v855_v17 = vpop.permute.xlu1 %854 }
0x1379   :  { %1144 = vmatmul.mubr.msk.f32.vlgmr.msra.gmra.mrb[8].mxu0 %vm147_vm2, %v855_v17 }
0x144c   :  { %v924_v19 = vpop.f32.mrb[8].mxu0 }
0x144d   :  { %v928_v20 = vadd.f32 %v924_v19, %v852_v18  ;;  %v1145_v21 = vpop.f32.mrb[9].mxu0 }
0x144f   :  { %1264 = vtanh.f32 %v928_v20  ;;  %v1007_v23 = vmul.f32 -1.442695, %v928_v20 }
0x1451   :  { %1266 = vpow2.f32 %v1007_v23 }
0x1459   :  { %v1265_v22 = vpop.eup %1264 }
0x145a   :  { %938 = vrot.lane.b32.xlu0 %v1265_v22, %s1378_s26 }
0x145b   :  { %v1267_v24 = vpop.eup %1266 }
0x145c   :  { %v932_v25 = vadd.f32 1.0, %v1267_v24 }
0x145e   :  { %1268 = vrcp.f32 %v932_v25 }
0x1468   :  { %v1269_v26 = vpop.eup %1268 }
0x1469   :  { %v936_v29 = vmul.f32 %v1269_v26, %v845_v13 }
0x14cc   :  { %v939_v27 = vpop.permute.xlu0 %938 }
0x14cd   :  { %v941_v28 = vmul.f32 %v1269_v26, %v939_v27 }
0x14cf   :  { %943 = vrot.lane.b32.xlu1 %v941_v28, %s1379_s3 }
0x1541   :  { %v944_v30 = vpop.permute.xlu1 %943 }
0x1542   :  { %v946_v31 = vadd.f32 %v944_v30, %v936_v29 }
0x1544   :  { %1270 = vtanh.f32 %v946_v31 }
0x154e   :  { %v1271_v32 = vpop.eup %1270 }
0x154f   :  { %949 = vrot.lane.b32.xlu0 %v1271_v32, %s1378_s26 }
0x15c1   :  { %v950_v33 = vpop.permute.xlu0 %949 }
0x15c2   :  { %v952_v34 = vmul.f32 %v1269_v26, %v950_v33 }
0x15c4   :  { %v954_v35 = vsel %vm953_vm3, %v952_v34, -inf }
0x15c5   :  { %955 = vmax.xlane.f32.xlu1 %v954_v35 }
0x1652   :  { %v956_v36 = vpop.xlane.xlu1 %955 }
0x1653   :  { %v957_v37 = vsub.f32 %v952_v34, %v956_v36 }
0x1655   :  { %v958_v38 = vmul.f32 1.442695, %v957_v37 }
0x1657   :  { %1272 = vpow2.f32 %v958_v38 }
0x1661   :  { %v1273_v39 = vpop.eup %1272 }
0x1662   :  { %961 = vrot.lane.b32.xlu0 %v1273_v39, %s1379_s3 }
0x16d4   :  { %v962_v40 = vpop.permute.xlu0 %961 }
0x16d5   :  { %v965_v41 = vsel %vm964_vm4, %v962_v40, 0.0 }
0x16d6   :  { %966 = vadd.xlane.f32.xlu0 %v965_v41 }
0x1763   :  { %v967_v42 = vpop.xlane.xlu0 %966 }
0x1764   :  { %1274 = vrcp.f32 %v967_v42 }
0x176e   :  { %v1275_v43 = vpop.eup %1274 }
0x176f   :  { %v969_v44 = vmul.f32 %v1275_v43, %v1273_v39 }
0x1771   :  { %971 = vrot.lane.b32.xlu1 %v969_v44, %s1379_s3 }
0x17e3   :  { %v972_v45 = vpop.permute.xlu1 %971 }
0x17e4   :  { %974 = vst.msk [vmem:[#allocation9] sm:$0x1] %vm964_vm4, %v972_v45 }
0x17e5   :  { %1353 = shalt.err (!%p1350_p0)
}
0x17e6   :  { %s1354_s7 = scalar_lea.hbm %s1563_s4, 16 }
0x17e7   :  { %p1355_p1 = scmp.ne.s32.totalorder %s1563_s4, %s1354_s7  ;;  %p1358_p2 = scmp.lt.u32.totalorder %s1354_s7, %s1563_s4 }
0x17e9   :  { %p1360_p3 = pnand %p1358_p2, %p1355_p1 }
0x17eb   :  { %1363 = shalt.err (!%p1360_p3)
}
0x17ec   :  { %984 = dma.vmem_to_hbm [thread:$0]  %s982_s28, 16, %s1563_s4, [#allocation5]  }
0x17ed   :  { %1368 = dma.done.wait [#allocation5], 16  }
0x17ee   :  { %1369 = vsyncadd [#allocation5], 4294967280 }
0x17ef   :  { %988 = vsyncpa [#allocation4], 1 }
0x17f0   :  { %989 = vsyncpa [#allocation7], 1 }
0x17f1   :  { %990 = vsyncpa [#allocation5], 1 }

</bundles_post_ra>
